<compile_context>
chip_gen: v5e
topology: v5e:2x2
jax: 0.10.0
libtpu: 0.0.40
codegen_flags: <defaults>
</compile_context>

<pallas_src>
import functools

import jax
import jax.numpy as jnp
from jax.experimental import pallas as pl
from jax.experimental.pallas import tpu as pltpu

_STRIP = 128  # lane width of one adjacency strip (keeps counts at <= 16 vregs)


# ----------------------------------------------------------------------------
# Stage 1: gather-sum(a2b) -> concat-FFN -> LayerNorm   (per-atom, tiled)
# ----------------------------------------------------------------------------
def _atom_stage_kernel(tab_ref, band_ref, bond_ref, f_atoms_ref, a2b_ref,
                       w1a_ref, w1b_ref, b1_ref, w2_ref, b2_ref,
                       ln_g_ref, ln_b_ref,
                       bia_ref, aggr_acc, *, h_real, strip):
    f32 = jnp.float32
    bf16 = jnp.bfloat16
    i = pl.program_id(0)
    k = pl.program_id(1)
    lo = band_ref[i, 0]
    hi = band_ref[i, 1]
    del tab_ref  # only consumed by the bond index_map

    @pl.when(k == 0)
    def _init():
        aggr_acc[...] = jnp.zeros_like(aggr_acc)

    # --- blocked select_neighbor_and_aggregate, band-sparse + strip-mined ----
    # aggr[i] = sum_k bond[a2b[i,k]], as (TA,strip) one-hot strips (with
    # multiplicity, matching torch index_select_ND + sum; relies on the GROVER
    # convention bond[0] == 0 for padded a2b slots) times bond strips.
    @pl.when(lo + k <= hi)
    def _accumulate():
        ktile = lo + k                                    # real bond-tile index
        a2b = a2b_ref[...]                                # (TA, K) int32
        TA, K = a2b.shape
        TNB = bond_ref.shape[0]
        n_strips = TNB // strip
        col = jax.lax.broadcasted_iota(jnp.int32, (TA, strip), 1)  # hoisted
        for s in range(n_strips):                         # small & static
            rel = a2b - (ktile * TNB + s * strip)         # (TA, K)
            counts = jnp.zeros((TA, strip), jnp.int32)
            for kk in range(K):                           # K is small & static
                counts = counts + (rel[:, kk:kk + 1] == col).astype(jnp.int32)
            adj = counts.astype(bf16)                     # small ints: exact in bf16
            aggr_acc[...] += jnp.dot(adj, bond_ref[pl.ds(s * strip, strip), :],
                                     preferred_element_type=f32)

    @pl.when(k == pl.num_programs(1) - 1)
    def _finalize():
        aggr = aggr_acc[...]                              # (TA, Hp) f32
        # ffn_atom_from_bond(concat([f_atoms, aggr])) as a split matmul.
        h = (jnp.dot(f_atoms_ref[...], w1a_ref[...], preferred_element_type=f32)
             + jnp.dot(aggr.astype(bf16), w1b_ref[...], preferred_element_type=f32)
             + b1_ref[...])
        h = jnp.maximum(h, 0.0)                           # ReLU (f32)
        h = jnp.dot(h.astype(bf16), w2_ref[...], preferred_element_type=f32) + b2_ref[...]

        # atom_from_bond_sublayer: LayerNorm over the REAL hidden dim h_real
        # (padded columns of h are exactly zero, so sums over Hp are exact).
        inv_h = 1.0 / float(h_real)
        mean = jnp.sum(h, axis=-1, keepdims=True) * inv_h
        var = jnp.maximum(
            jnp.sum(h * h, axis=-1, keepdims=True) * inv_h - mean * mean, 0.0)
        bia = (h - mean) * jax.lax.rsqrt(var + 1e-5) * ln_g_ref[...] + ln_b_ref[...]
        bia_ref[...] = bia.astype(bia_ref.dtype)


# ----------------------------------------------------------------------------
# Stage 2: per-molecule mean readout -> concat-FFN -> sigmoid
# ----------------------------------------------------------------------------
def _mol_stage_kernel(bia_ref, starts_ref, sizes_ref, feats_ref,
                      wf1a_ref, wf1b_ref, bf1_ref, wf2_ref, bf2_ref,
                      out_ref, mol_acc):
    f32 = jnp.float32
    bf16 = jnp.bfloat16
    i = pl.program_id(0)

    @pl.when(i == 0)
    def _init():
        mol_acc[...] = jnp.zeros_like(mol_acc)

    TA = bia_ref.shape[0]
    MP = starts_ref.shape[0]
    starts = starts_ref[...]                              # (MP, 1) int32
    sizes = sizes_ref[...]                                # (MP, 1) int32
    atom_ids = jax.lax.broadcasted_iota(jnp.int32, (MP, TA), 1) + i * TA
    in_mol = (atom_ids >= starts) & (atom_ids < starts + sizes)
    # Accumulate with an exact {0,1} bf16 mask; 1/size is applied once in f32
    # inside _finalize (removes a per-step (MP,TA) multiply + bf16 rounding).
    mol_acc[...] += jnp.dot(in_mol.astype(bf16), bia_ref[...],
                            preferred_element_type=f32)

    @pl.when(i == pl.num_programs(0) - 1)
    def _finalize():
        # safe reciprocal: never divide by zero for empty/padded molecules
        inv_sz = jnp.where(sizes > 0,
                           1.0 / jnp.maximum(sizes, 1).astype(f32), 0.0)
        mol = mol_acc[...] * inv_sz                       # (MP, Hp) f32, mean readout
        # mol_atom_from_bond_ffn(concat([mol, features])) as a split matmul.
        z = (jnp.dot(mol.astype(bf16), wf1a_ref[...], preferred_element_type=f32)
             + jnp.dot(feats_ref[...], wf1b_ref[...], preferred_element_type=f32)
             + bf1_ref[...])
        z = jnp.maximum(z, 0.0)                           # ReLU (f32)
        out = jnp.dot(z.astype(bf16), wf2_ref[...], preferred_element_type=f32) + bf2_ref[...]
        out_ref[...] = jax.nn.sigmoid(out).astype(out_ref.dtype)  # classification, eval


# ----------------------------------------------------------------------------
# Wrapper: padding to lane-dense dims, band precompute, tiling, two pallas_calls
# ----------------------------------------------------------------------------
def _round_up(n, m):
    return ((n + m - 1) // m) * m


def _pad2(x, rows, cols):
    return jnp.pad(x, ((0, rows - x.shape[0]), (0, cols - x.shape[1])))


def bond_in_atom_out(bond, f_atoms, a2b, a_scope, feats, p, *, ta=128, tnb=512):
    bf16 = jnp.bfloat16
    A, F = f_atoms.shape
    NB, H = bond.shape
    K = a2b.shape[1]
    M, FD = feats.shape
    D1 = p["w1a"].shape[1]
    FH = p["wf1a"].shape[1]
    O = p["wf2"].shape[1]

    # tile sizes (clamped for small inputs) and padded, lane-dense dims
    TA = min(ta, _round_up(A, 8))
    TNB = min(_round_up(tnb, _STRIP), _round_up(NB, _STRIP))
    assert TNB % _STRIP == 0
    A_pad = _round_up(A, TA)
    NB_pad = _round_up(NB, TNB)
    Hp = _round_up(H, 128)
    D1p = _round_up(D1, 128)
    FHp = _round_up(FH, 128)
    Op = _round_up(O, 128)
    MP = _round_up(M, 8)
    nA = A_pad // TA
    nNB = NB_pad // TNB

    # pad + cast MXU operands to bf16 (halves HBM/VMEM traffic); keep biases,
    # LayerNorm params and index tensors in f32/int32.
    bond_p = _pad2(bond, NB_pad, Hp).astype(bf16)
    f_atoms_p = _pad2(f_atoms, A_pad, F).astype(bf16)
    a2b_p = _pad2(a2b.astype(jnp.int32), A_pad, K)
    w1a_p = _pad2(p["w1a"], F, D1p).astype(bf16)
    w1b_p = _pad2(p["w1b"], Hp, D1p).astype(bf16)
    b1_p = _pad2(p["b1"], 1, D1p)
    w2_p = _pad2(p["w2"], D1p, Hp).astype(bf16)
    b2_p = _pad2(p["b2"], 1, Hp)
    ln_g_p = _pad2(p["ln_g"], 1, Hp)
    ln_b_p = _pad2(p["ln_b"], 1, Hp)
    starts_p = _pad2(a_scope[:, 0:1].astype(jnp.int32), MP, 1)
    sizes_p = _pad2(a_scope[:, 1:2].astype(jnp.int32), MP, 1)
    feats_p = _pad2(feats, MP, FD).astype(bf16)
    wf1a_p = _pad2(p["wf1a"], Hp, FHp).astype(bf16)
    wf1b_p = _pad2(p["wf1b"], FD, FHp).astype(bf16)
    bf1_p = _pad2(p["bf1"], 1, FHp)
    wf2_p = _pad2(p["wf2"], FHp, Op).astype(bf16)
    bf2_p = _pad2(p["bf2"], 1, Op)

    # -- per-atom-tile live bond-tile band (block sparsity of a2b) ------------
    # Padding entries (a2b == 0, the GROVER padding bond) are ignored so that
    # tile 0 is not dragged into every band; if bond[0] ends up inside a band
    # anyway it contributes 0 by convention.
    bt = a2b_p // TNB                                     # (A_pad, K)
    valid = a2b_p > 0
    bt_r = bt.reshape(nA, TA * K)
    valid_r = valid.reshape(nA, TA * K)
    lo = jnp.min(jnp.where(valid_r, bt_r, nNB - 1), axis=1)
    hi = jnp.max(jnp.where(valid_r, bt_r, 0), axis=1)
    lo = jnp.minimum(lo, hi)                              # all-padding tiles -> [0,0]
    band = jnp.stack([lo, hi], axis=1).astype(jnp.int32)  # (nA, 2)
    # clamped bond-tile lookup table for the data-dependent index_map; out-of-band
    # k repeats the last in-band block index => Pallas skips the re-DMA.
    ktile_tab = jnp.minimum(
        lo[:, None] + jnp.arange(nNB, dtype=jnp.int32)[None, :],
        hi[:, None]).astype(jnp.int32)                    # (nA, nNB)

    def nbytes(*xs):
        return int(sum(x.size * x.dtype.itemsize for x in xs))

    # ---------------- stage 1: per-atom gather + FFN + LayerNorm ------------
    stage1_args = (bond_p, f_atoms_p, a2b_p, w1a_p, w1b_p, b1_p, w2_p, b2_p,
                   ln_g_p, ln_b_p)
    flops1 = (2 * A_pad * NB_pad * Hp
              + 2 * A_pad * (F * D1p + Hp * D1p + D1p * Hp)
              + 12 * A_pad * Hp)
    bytes1 = nbytes(*stage1_args) + A_pad * Hp * 2

    bia = pl.pallas_call(
        functools.partial(_atom_stage_kernel, h_real=H, strip=_STRIP),
        out_shape=jax.ShapeDtypeStruct((A_pad, Hp), bf16),
        grid_spec=pltpu.PrefetchScalarGridSpec(
            num_scalar_prefetch=2,
            grid=(nA, nNB),
            in_specs=[
                # bond tile: data-dependent (band-clamped) block index
                pl.BlockSpec((TNB, Hp), lambda i, k, tab, bnd: (tab[i, k], 0)),
                pl.BlockSpec((TA, F), lambda i, k, tab, bnd: (i, 0)),     # f_atoms
                pl.BlockSpec((TA, K), lambda i, k, tab, bnd: (i, 0)),     # a2b
                pl.BlockSpec((F, D1p), lambda i, k, tab, bnd: (0, 0)),    # W1 (atom)
                pl.BlockSpec((Hp, D1p), lambda i, k, tab, bnd: (0, 0)),   # W1 (aggr)
                pl.BlockSpec((1, D1p), lambda i, k, tab, bnd: (0, 0)),    # b1
                pl.BlockSpec((D1p, Hp), lambda i, k, tab, bnd: (0, 0)),   # W2
                pl.BlockSpec((1, Hp), lambda i, k, tab, bnd: (0, 0)),     # b2
                pl.BlockSpec((1, Hp), lambda i, k, tab, bnd: (0, 0)),     # LN gamma
                pl.BlockSpec((1, Hp), lambda i, k, tab, bnd: (0, 0)),     # LN beta
            ],
            out_specs=pl.BlockSpec((TA, Hp), lambda i, k, tab, bnd: (i, 0)),
            scratch_shapes=[pltpu.VMEM((TA, Hp), jnp.float32)],
        ),
        compiler_params=pltpu.CompilerParams(
            dimension_semantics=("parallel", "arbitrary"),
            # modest limit: safe on v7x (64 MiB physical VMEM); tiles here are small
            vmem_limit_bytes=32 * 1024 * 1024,
        ),
        cost_estimate=pl.CostEstimate(
            flops=int(flops1), transcendentals=int(A_pad),
            bytes_accessed=int(bytes1)),
    )(ktile_tab, band, *stage1_args)

    # ---------------- stage 2: readout mean + mol FFN + sigmoid -------------
    stage2_args = (bia, starts_p, sizes_p, feats_p,
                   wf1a_p, wf1b_p, bf1_p, wf2_p, bf2_p)
    flops2 = (2 * MP * A_pad * Hp
              + 2 * MP * (Hp * FHp + FD * FHp + FHp * Op)
              + 8 * MP * Op)
    bytes2 = nbytes(*stage2_args) + MP * Op * 4

    out_pad = pl.pallas_call(
        _mol_stage_kernel,
        out_shape=jax.ShapeDtypeStruct((MP, Op), jnp.float32),
        grid_spec=pltpu.PrefetchScalarGridSpec(
            num_scalar_prefetch=0,
            grid=(nA,),
            in_specs=[
                pl.BlockSpec((TA, Hp), lambda i: (i, 0)),       # bia tile
                pl.BlockSpec((MP, 1), lambda i: (0, 0)),        # a_scope starts
                pl.BlockSpec((MP, 1), lambda i: (0, 0)),        # a_scope sizes
                pl.BlockSpec((MP, FD), lambda i: (0, 0)),       # features_batch
                pl.BlockSpec((Hp, FHp), lambda i: (0, 0)),      # Wf1 (mol part)
                pl.BlockSpec((FD, FHp), lambda i: (0, 0)),      # Wf1 (feat part)
                pl.BlockSpec((1, FHp), lambda i: (0, 0)),       # bf1
                pl.BlockSpec((FHp, Op), lambda i: (0, 0)),      # Wf2
                pl.BlockSpec((1, Op), lambda i: (0, 0)),        # bf2
            ],
            out_specs=pl.BlockSpec((MP, Op), lambda i: (0, 0)),
            scratch_shapes=[pltpu.VMEM((MP, Hp), jnp.float32)],
        ),
        compiler_params=pltpu.CompilerParams(
            dimension_semantics=("arbitrary",),
            vmem_limit_bytes=32 * 1024 * 1024,
        ),
        cost_estimate=pl.CostEstimate(
            flops=int(flops2), transcendentals=int(MP * Op),
            bytes_accessed=int(bytes2)),
    )(*stage2_args)

    return out_pad[:M, :O]


# ----------------------------------------------------------------------------
# Pure-JAX f32 reference (mirrors the PyTorch forward, eval mode)
# ----------------------------------------------------------------------------
def reference(bond, f_atoms, a2b, a_scope, feats, p):
    aggr = bond[a2b].sum(axis=1)                          # index_select_ND + sum
    x = jnp.concatenate([f_atoms, aggr], axis=1)
    w1 = jnp.concatenate([p["w1a"], p["w1b"]], axis=0)
    h = jnp.maximum(x @ w1 + p["b1"], 0.0)
    h = h @ p["w2"] + p["b2"]
    mean = h.mean(-1, keepdims=True)
    var = ((h - mean) ** 2).mean(-1, keepdims=True)
    bia = (h - mean) / jnp.sqrt(var + 1e-5) * p["ln_g"] + p["ln_b"]
    mols = []
    for m in range(a_scope.shape[0]):
        s, n = int(a_scope[m, 0]), int(a_scope[m, 1])
        mols.append(bia[s:s + n].mean(0) if n > 0 else jnp.zeros(bia.shape[1]))
    mol = jnp.stack(mols)
    x2 = jnp.concatenate([mol, feats], axis=1)
    wf1 = jnp.concatenate([p["wf1a"], p["wf1b"]], axis=0)
    z = jnp.maximum(x2 @ wf1 + p["bf1"], 0.0)
    return jax.nn.sigmoid(z @ p["wf2"] + p["bf2"])


if __name__ == "__main__":
    # small shapes consistent with the module
    H = 32       # args.hidden_size
    F = 40       # atom feature dim (original_f_atoms)
    A = 16       # num atoms (incl. padding atom 0)
    NB = 24      # num bonds (incl. padding bond 0)
    K = 6        # max bonds per atom (a2b width)
    M = 2        # num molecules (len(a_scope))
    FD = 16      # features_dim
    D1 = 64      # ffn_atom_from_bond hidden (d_ff)
    FH = 32      # args.ffn_hidden_size
    O = 4        # args.output_size (num_tasks)

    key = jax.random.PRNGKey(0)
    ks = jax.random.split(key, 16)

    bond = jax.random.normal(ks[0], (NB, H), jnp.float32)
    bond = bond.at[0].set(0.0)                            # GROVER padding bond row
    f_atoms = jax.random.normal(ks[1], (A, F), jnp.float32)
    a2b = jax.random.randint(ks[2], (A, K), 0, NB, jnp.int32)
    a2b = a2b.at[0].set(0)                                # padding atom row
    a_scope = jnp.array([[1, 7], [8, 8]], jnp.int32)      # (start, size) per molecule
    feats = jax.random.normal(ks[3], (M, FD), jnp.float32)

    def init(k, shape, scale=0.1):
        return scale * jax.random.normal(k, shape, jnp.float32)

    params = {
        "w1a": init(ks[4], (F, D1)),   "w1b": init(ks[5], (H, D1)),
        "b1":  init(ks[6], (1, D1)),
        "w2":  init(ks[7], (D1, H)),   "b2": init(ks[8], (1, H)),
        "ln_g": jnp.ones((1, H), jnp.float32),
        "ln_b": jnp.zeros((1, H), jnp.float32),
        "wf1a": init(ks[9], (H, FH)),  "wf1b": init(ks[10], (FD, FH)),
        "bf1":  init(ks[11], (1, FH)),
        "wf2":  init(ks[12], (FH, O)), "bf2": init(ks[13], (1, O)),
    }

    out = bond_in_atom_out(bond, f_atoms, a2b, a_scope, feats, params)
    out = jax.block_until_ready(out)

    ref = reference(bond, f_atoms, a2b, a_scope, feats, params)
    assert out.shape == (M, O)
    # bf16 MXU operands with f32 accumulation -> loosened tolerance vs f32 ref.
    assert jnp.allclose(out, ref, rtol=5e-2, atol=2e-2), (out, ref)

    print("KERNEL_OK")
</pallas_src>

<mosaic_0001>
module attributes {stable_mosaic.version = 11 : i64} {
  func.func @_atom_stage_kernel(%arg0: i32, %arg1: i32, %arg2: memref<1x1xi32, #tpu.memory_space<smem>>, %arg3: memref<1x2xi32, #tpu.memory_space<smem>>, %arg4: memref<128x128xbf16, #tpu.memory_space<vmem>>, %arg5: memref<16x40xbf16, #tpu.memory_space<vmem>>, %arg6: memref<16x6xi32, #tpu.memory_space<vmem>>, %arg7: memref<40x128xbf16, #tpu.memory_space<vmem>>, %arg8: memref<128x128xbf16, #tpu.memory_space<vmem>>, %arg9: memref<1x128xf32, #tpu.memory_space<vmem>>, %arg10: memref<128x128xbf16, #tpu.memory_space<vmem>>, %arg11: memref<1x128xf32, #tpu.memory_space<vmem>>, %arg12: memref<1x128xf32, #tpu.memory_space<vmem>>, %arg13: memref<1x128xf32, #tpu.memory_space<vmem>>, %arg14: memref<16x128xbf16, #tpu.memory_space<vmem>>, %arg15: memref<16x128xf32, #tpu.memory_space<vmem>>) attributes {dimension_semantics = [#tpu.dimension_semantics<parallel>, #tpu.dimension_semantics<arbitrary>], iteration_bounds = array<i64: 1, 1>, scalar_prefetch = 2 : i64, scratch_operands = 1 : i64, tpu.core_type = #tpu.core_type<tc>, window_params = [{transform_indices = @transform_0, window_bounds = array<i64: 128, 128>}, {transform_indices = @transform_1, window_bounds = array<i64: 16, 40>}, {transform_indices = @transform_2, window_bounds = array<i64: 16, 6>}, {pipeline_mode = #tpu.pipeline_mode<synchronous>, transform_indices = @transform_3, window_bounds = array<i64: 40, 128>}, {pipeline_mode = #tpu.pipeline_mode<synchronous>, transform_indices = @transform_4, window_bounds = array<i64: 128, 128>}, {pipeline_mode = #tpu.pipeline_mode<synchronous>, transform_indices = @transform_5, window_bounds = array<i64: 1, 128>}, {pipeline_mode = #tpu.pipeline_mode<synchronous>, transform_indices = @transform_6, window_bounds = array<i64: 128, 128>}, {pipeline_mode = #tpu.pipeline_mode<synchronous>, transform_indices = @transform_7, window_bounds = array<i64: 1, 128>}, {pipeline_mode = #tpu.pipeline_mode<synchronous>, transform_indices = @transform_8, window_bounds = array<i64: 1, 128>}, {pipeline_mode = #tpu.pipeline_mode<synchronous>, transform_indices = @transform_9, window_bounds = array<i64: 1, 128>}, {transform_indices = @transform_10, window_bounds = array<i64: 16, 128>}]} {
    %0 = arith.index_cast %arg0 : i32 to index
    %c0 = arith.constant 0 : index
    %1 = memref.load %arg3[%0, %c0] : memref<1x2xi32, #tpu.memory_space<smem>>
    %2 = arith.index_cast %arg0 : i32 to index
    %c1 = arith.constant 1 : index
    %3 = memref.load %arg3[%2, %c1] : memref<1x2xi32, #tpu.memory_space<smem>>
    %c0_i32 = arith.constant 0 : i32
    %4 = arith.cmpi eq, %arg1, %c0_i32 : i32
    %5 = arith.extui %4 : i1 to i32
    %c0_i32_0 = arith.constant 0 : i32
    %6 = arith.cmpi ne, %5, %c0_i32_0 : i32
    scf.if %6 {
      %cst = arith.constant 0.000000e+00 : f32
      %14 = vector.broadcast %cst : f32 to vector<16x128xf32>
      %c0_4 = arith.constant 0 : index
      %c0_5 = arith.constant 0 : index
      %15 = vector.load %arg15[%c0_4, %c0_5] : memref<16x128xf32, #tpu.memory_space<vmem>>, vector<16x128xf32>
      tpu.vector_store %arg15[%c0_4, %c0_5], %14 {strides = array<i32>} : memref<16x128xf32, #tpu.memory_space<vmem>>, vector<16x128xf32>,
    } else {
    }
    %7 = arith.addi %1, %arg1 : i32
    %8 = arith.cmpi sle, %7, %3 : i32
    %9 = arith.extui %8 : i1 to i32
    %c0_i32_1 = arith.constant 0 : i32
    %10 = arith.cmpi ne, %9, %c0_i32_1 : i32
    scf.if %10 {
      %14 = arith.addi %1, %arg1 : i32
      %c0_4 = arith.constant 0 : index
      %c0_5 = arith.constant 0 : index
      %15 = vector.load %arg6[%c0_4, %c0_5] : memref<16x6xi32, #tpu.memory_space<vmem>>, vector<16x6xi32>
      %16 = tpu.iota {dimensions = array<i32: 1>} : vector<16x128xi32>
      %c128_i32 = arith.constant 128 : i32
      %17 = arith.muli %14, %c128_i32 : i32
      %c0_i32_6 = arith.constant 0 : i32
      %18 = arith.addi %17, %c0_i32_6 : i32
      %19 = vector.broadcast %18 : i32 to vector<16x6xi32>
      %20 = arith.subi %15, %19 : vector<16x6xi32>
      %c0_i32_7 = arith.constant 0 : i32
      %21 = vector.broadcast %c0_i32_7 : i32 to vector<16x128xi32>
      %22 = vector.extract_strided_slice %20 {offsets = [0, 0], sizes = [16, 1], strides = [1, 1]} : vector<16x6xi32> to vector<16x1xi32>
      %23 = vector.broadcast %22 : vector<16x1xi32> to vector<16x128xi32>
      %24 = arith.cmpi eq, %23, %16 : vector<16x128xi32>
      %25 = arith.extui %24 : vector<16x128xi1> to vector<16x128xi32>
      %26 = arith.addi %21, %25 : vector<16x128xi32>
      %27 = vector.extract_strided_slice %20 {offsets = [0, 1], sizes = [16, 1], strides = [1, 1]} : vector<16x6xi32> to vector<16x1xi32>
      %28 = vector.broadcast %27 : vector<16x1xi32> to vector<16x128xi32>
      %29 = arith.cmpi eq, %28, %16 : vector<16x128xi32>
      %30 = arith.extui %29 : vector<16x128xi1> to vector<16x128xi32>
      %31 = arith.addi %26, %30 : vector<16x128xi32>
      %32 = vector.extract_strided_slice %20 {offsets = [0, 2], sizes = [16, 1], strides = [1, 1]} : vector<16x6xi32> to vector<16x1xi32>
      %33 = vector.broadcast %32 : vector<16x1xi32> to vector<16x128xi32>
      %34 = arith.cmpi eq, %33, %16 : vector<16x128xi32>
      %35 = arith.extui %34 : vector<16x128xi1> to vector<16x128xi32>
      %36 = arith.addi %31, %35 : vector<16x128xi32>
      %37 = vector.extract_strided_slice %20 {offsets = [0, 3], sizes = [16, 1], strides = [1, 1]} : vector<16x6xi32> to vector<16x1xi32>
      %38 = vector.broadcast %37 : vector<16x1xi32> to vector<16x128xi32>
      %39 = arith.cmpi eq, %38, %16 : vector<16x128xi32>
      %40 = arith.extui %39 : vector<16x128xi1> to vector<16x128xi32>
      %41 = arith.addi %36, %40 : vector<16x128xi32>
      %42 = vector.extract_strided_slice %20 {offsets = [0, 4], sizes = [16, 1], strides = [1, 1]} : vector<16x6xi32> to vector<16x1xi32>
      %43 = vector.broadcast %42 : vector<16x1xi32> to vector<16x128xi32>
      %44 = arith.cmpi eq, %43, %16 : vector<16x128xi32>
      %45 = arith.extui %44 : vector<16x128xi1> to vector<16x128xi32>
      %46 = arith.addi %41, %45 : vector<16x128xi32>
      %47 = vector.extract_strided_slice %20 {offsets = [0, 5], sizes = [16, 1], strides = [1, 1]} : vector<16x6xi32> to vector<16x1xi32>
      %48 = vector.broadcast %47 : vector<16x1xi32> to vector<16x128xi32>
      %49 = arith.cmpi eq, %48, %16 : vector<16x128xi32>
      %50 = arith.extui %49 : vector<16x128xi1> to vector<16x128xi32>
      %51 = arith.addi %46, %50 : vector<16x128xi32>
      %52 = arith.sitofp %51 : vector<16x128xi32> to vector<16x128xbf16>
      %c0_8 = arith.constant 0 : index
      %c0_9 = arith.constant 0 : index
      %53 = vector.load %arg15[%c0_8, %c0_9] : memref<16x128xf32, #tpu.memory_space<vmem>>, vector<16x128xf32>
      %c0_10 = arith.constant 0 : index
      %c0_11 = arith.constant 0 : index
      %54 = vector.load %arg4[%c0_10, %c0_11] : memref<128x128xbf16, #tpu.memory_space<vmem>>, vector<128x128xbf16>
      %cst = arith.constant dense<0.000000e+00> : vector<16x128xf32>
      %55 = tpu.matmul %52, %54, %cst {dimension_numbers = #tpu.dot_dimension_numbers<[1], [0], [0], [1], [0, 0, 1, 1], [], []>} : vector<16x128xbf16>, vector<128x128xbf16>, vector<16x128xf32> -> vector<16x128xf32>
      %56 = arith.addf %53, %55 : vector<16x128xf32>
      %c0_12 = arith.constant 0 : index
      %c0_13 = arith.constant 0 : index
      %57 = vector.load %arg15[%c0_12, %c0_13] : memref<16x128xf32, #tpu.memory_space<vmem>>, vector<16x128xf32>
      tpu.vector_store %arg15[%c0_12, %c0_13], %56 {strides = array<i32>} : memref<16x128xf32, #tpu.memory_space<vmem>>, vector<16x128xf32>,
    } else {
    }
    %c0_i32_2 = arith.constant 0 : i32
    %11 = arith.cmpi eq, %arg1, %c0_i32_2 : i32
    %12 = arith.extui %11 : i1 to i32
    %c0_i32_3 = arith.constant 0 : i32
    %13 = arith.cmpi ne, %12, %c0_i32_3 : i32
    scf.if %13 {
      %c0_4 = arith.constant 0 : index
      %c0_5 = arith.constant 0 : index
      %14 = vector.load %arg15[%c0_4, %c0_5] : memref<16x128xf32, #tpu.memory_space<vmem>>, vector<16x128xf32>
      %c0_6 = arith.constant 0 : index
      %c0_7 = arith.constant 0 : index
      %15 = vector.load %arg5[%c0_6, %c0_7] : memref<16x40xbf16, #tpu.memory_space<vmem>>, vector<16x40xbf16>
      %c0_8 = arith.constant 0 : index
      %c0_9 = arith.constant 0 : index
      %16 = vector.load %arg7[%c0_8, %c0_9] : memref<40x128xbf16, #tpu.memory_space<vmem>>, vector<40x128xbf16>
      %cst = arith.constant dense<0.000000e+00> : vector<16x128xf32>
      %17 = tpu.matmul %15, %16, %cst {dimension_numbers = #tpu.dot_dimension_numbers<[1], [0], [0], [1], [0, 0, 1, 1], [], []>} : vector<16x40xbf16>, vector<40x128xbf16>, vector<16x128xf32> -> vector<16x128xf32>
      %18 = arith.truncf %14 : vector<16x128xf32> to vector<16x128xbf16>
      %c0_10 = arith.constant 0 : index
      %c0_11 = arith.constant 0 : index
      %19 = vector.load %arg8[%c0_10, %c0_11] : memref<128x128xbf16, #tpu.memory_space<vmem>>, vector<128x128xbf16>
      %cst_12 = arith.constant dense<0.000000e+00> : vector<16x128xf32>
      %20 = tpu.matmul %18, %19, %cst_12 {dimension_numbers = #tpu.dot_dimension_numbers<[1], [0], [0], [1], [0, 0, 1, 1], [], []>} : vector<16x128xbf16>, vector<128x128xbf16>, vector<16x128xf32> -> vector<16x128xf32>
      %21 = arith.addf %17, %20 : vector<16x128xf32>
      %c0_13 = arith.constant 0 : index
      %c0_14 = arith.constant 0 : index
      %22 = vector.load %arg9[%c0_13, %c0_14] : memref<1x128xf32, #tpu.memory_space<vmem>>, vector<1x128xf32>
      %23 = vector.broadcast %22 : vector<1x128xf32> to vector<16x128xf32>
      %24 = arith.addf %21, %23 : vector<16x128xf32>
      %cst_15 = arith.constant 0.000000e+00 : f32
      %25 = vector.broadcast %cst_15 : f32 to vector<16x128xf32>
      %26 = arith.maximumf %24, %25 : vector<16x128xf32>
      %27 = arith.truncf %26 : vector<16x128xf32> to vector<16x128xbf16>
      %c0_16 = arith.constant 0 : index
      %c0_17 = arith.constant 0 : index
      %28 = vector.load %arg10[%c0_16, %c0_17] : memref<128x128xbf16, #tpu.memory_space<vmem>>, vector<128x128xbf16>
      %cst_18 = arith.constant dense<0.000000e+00> : vector<16x128xf32>
      %29 = tpu.matmul %27, %28, %cst_18 {dimension_numbers = #tpu.dot_dimension_numbers<[1], [0], [0], [1], [0, 0, 1, 1], [], []>} : vector<16x128xbf16>, vector<128x128xbf16>, vector<16x128xf32> -> vector<16x128xf32>
      %c0_19 = arith.constant 0 : index
      %c0_20 = arith.constant 0 : index
      %30 = vector.load %arg11[%c0_19, %c0_20] : memref<1x128xf32, #tpu.memory_space<vmem>>, vector<1x128xf32>
      %31 = vector.broadcast %30 : vector<1x128xf32> to vector<16x128xf32>
      %32 = arith.addf %29, %31 : vector<16x128xf32>
      %cst_21 = arith.constant dense<0.000000e+00> : vector<16xf32>
      %33 = vector.multi_reduction <add>, %32, %cst_21 [1] : vector<16x128xf32> to vector<16xf32>
      %34 = vector.shape_cast %33 : vector<16xf32> to vector<16x1xf32>
      %cst_22 = arith.constant 3.125000e-02 : f32
      %35 = vector.broadcast %cst_22 : f32 to vector<16x1xf32>
      %36 = arith.mulf %34, %35 : vector<16x1xf32>
      %37 = arith.mulf %32, %32 : vector<16x128xf32>
      %cst_23 = arith.constant dense<0.000000e+00> : vector<16xf32>
      %38 = vector.multi_reduction <add>, %37, %cst_23 [1] : vector<16x128xf32> to vector<16xf32>
      %39 = vector.shape_cast %38 : vector<16xf32> to vector<16x1xf32>
      %cst_24 = arith.constant 3.125000e-02 : f32
      %40 = vector.broadcast %cst_24 : f32 to vector<16x1xf32>
      %41 = arith.mulf %39, %40 : vector<16x1xf32>
      %42 = arith.mulf %36, %36 : vector<16x1xf32>
      %43 = arith.subf %41, %42 : vector<16x1xf32>
      %cst_25 = arith.constant 0.000000e+00 : f32
      %44 = vector.broadcast %cst_25 : f32 to vector<16x1xf32>
      %45 = arith.maximumf %43, %44 : vector<16x1xf32>
      %46 = vector.broadcast %36 : vector<16x1xf32> to vector<16x128xf32>
      %47 = arith.subf %32, %46 : vector<16x128xf32>
      %cst_26 = arith.constant 9.99999974E-6 : f32
      %48 = vector.broadcast %cst_26 : f32 to vector<16x1xf32>
      %49 = arith.addf %45, %48 : vector<16x1xf32>
      %50 = math.rsqrt %49 : vector<16x1xf32>
      %51 = vector.broadcast %50 : vector<16x1xf32> to vector<16x128xf32>
      %52 = arith.mulf %47, %51 : vector<16x128xf32>
      %c0_27 = arith.constant 0 : index
      %c0_28 = arith.constant 0 : index
      %53 = vector.load %arg12[%c0_27, %c0_28] : memref<1x128xf32, #tpu.memory_space<vmem>>, vector<1x128xf32>
      %54 = vector.broadcast %53 : vector<1x128xf32> to vector<16x128xf32>
      %55 = arith.mulf %52, %54 : vector<16x128xf32>
      %c0_29 = arith.constant 0 : index
      %c0_30 = arith.constant 0 : index
      %56 = vector.load %arg13[%c0_29, %c0_30] : memref<1x128xf32, #tpu.memory_space<vmem>>, vector<1x128xf32>
      %57 = vector.broadcast %56 : vector<1x128xf32> to vector<16x128xf32>
      %58 = arith.addf %55, %57 : vector<16x128xf32>
      %59 = arith.truncf %58 : vector<16x128xf32> to vector<16x128xbf16>
      %c0_31 = arith.constant 0 : index
      %c0_32 = arith.constant 0 : index
      %60 = vector.load %arg14[%c0_31, %c0_32] : memref<16x128xbf16, #tpu.memory_space<vmem>>, vector<16x128xbf16>
      tpu.vector_store %arg14[%c0_31, %c0_32], %59 {strides = array<i32>} : memref<16x128xbf16, #tpu.memory_space<vmem>>, vector<16x128xbf16>,
    } else {
    }
    return
  }
  func.func @transform_0(%arg0: i32, %arg1: i32, %arg2: memref<1x1xi32, #tpu.memory_space<smem>>, %arg3: memref<1x2xi32, #tpu.memory_space<smem>>) -> (i32, i32) {
    %0 = arith.index_cast %arg0 : i32 to index
    %1 = arith.index_cast %arg1 : i32 to index
    %2 = memref.load %arg2[%0, %1] : memref<1x1xi32, #tpu.memory_space<smem>>
    %c0_i32 = arith.constant 0 : i32
    %c0_i32_0 = arith.constant 0 : i32
    return %2, %c0_i32 : i32, i32
  }
  func.func @transform_1(%arg0: i32, %arg1: i32, %arg2: memref<1x1xi32, #tpu.memory_space<smem>>, %arg3: memref<1x2xi32, #tpu.memory_space<smem>>) -> (i32, i32) {
    %c0_i32 = arith.constant 0 : i32
    %c0_i32_0 = arith.constant 0 : i32
    return %arg0, %c0_i32 : i32, i32
  }
  func.func @transform_2(%arg0: i32, %arg1: i32, %arg2: memref<1x1xi32, #tpu.memory_space<smem>>, %arg3: memref<1x2xi32, #tpu.memory_space<smem>>) -> (i32, i32) {
    %c0_i32 = arith.constant 0 : i32
    %c0_i32_0 = arith.constant 0 : i32
    return %arg0, %c0_i32 : i32, i32
  }
  func.func @transform_3(%arg0: i32, %arg1: i32, %arg2: memref<1x1xi32, #tpu.memory_space<smem>>, %arg3: memref<1x2xi32, #tpu.memory_space<smem>>) -> (i32, i32) {
    %c0_i32 = arith.constant 0 : i32
    %c0_i32_0 = arith.constant 0 : i32
    %c0_i32_1 = arith.constant 0 : i32
    return %c0_i32, %c0_i32_0 : i32, i32
  }
  func.func @transform_4(%arg0: i32, %arg1: i32, %arg2: memref<1x1xi32, #tpu.memory_space<smem>>, %arg3: memref<1x2xi32, #tpu.memory_space<smem>>) -> (i32, i32) {
    %c0_i32 = arith.constant 0 : i32
    %c0_i32_0 = arith.constant 0 : i32
    %c0_i32_1 = arith.constant 0 : i32
    return %c0_i32, %c0_i32_0 : i32, i32
  }
  func.func @transform_5(%arg0: i32, %arg1: i32, %arg2: memref<1x1xi32, #tpu.memory_space<smem>>, %arg3: memref<1x2xi32, #tpu.memory_space<smem>>) -> (i32, i32) {
    %c0_i32 = arith.constant 0 : i32
    %c0_i32_0 = arith.constant 0 : i32
    %c0_i32_1 = arith.constant 0 : i32
    return %c0_i32, %c0_i32_0 : i32, i32
  }
  func.func @transform_6(%arg0: i32, %arg1: i32, %arg2: memref<1x1xi32, #tpu.memory_space<smem>>, %arg3: memref<1x2xi32, #tpu.memory_space<smem>>) -> (i32, i32) {
    %c0_i32 = arith.constant 0 : i32
    %c0_i32_0 = arith.constant 0 : i32
    %c0_i32_1 = arith.constant 0 : i32
    return %c0_i32, %c0_i32_0 : i32, i32
  }
  func.func @transform_7(%arg0: i32, %arg1: i32, %arg2: memref<1x1xi32, #tpu.memory_space<smem>>, %arg3: memref<1x2xi32, #tpu.memory_space<smem>>) -> (i32, i32) {
    %c0_i32 = arith.constant 0 : i32
    %c0_i32_0 = arith.constant 0 : i32
    %c0_i32_1 = arith.constant 0 : i32
    return %c0_i32, %c0_i32_0 : i32, i32
  }
  func.func @transform_8(%arg0: i32, %arg1: i32, %arg2: memref<1x1xi32, #tpu.memory_space<smem>>, %arg3: memref<1x2xi32, #tpu.memory_space<smem>>) -> (i32, i32) {
    %c0_i32 = arith.constant 0 : i32
    %c0_i32_0 = arith.constant 0 : i32
    %c0_i32_1 = arith.constant 0 : i32
    return %c0_i32, %c0_i32_0 : i32, i32
  }
  func.func @transform_9(%arg0: i32, %arg1: i32, %arg2: memref<1x1xi32, #tpu.memory_space<smem>>, %arg3: memref<1x2xi32, #tpu.memory_space<smem>>) -> (i32, i32) {
    %c0_i32 = arith.constant 0 : i32
    %c0_i32_0 = arith.constant 0 : i32
    %c0_i32_1 = arith.constant 0 : i32
    return %c0_i32, %c0_i32_0 : i32, i32
  }
  func.func @transform_10(%arg0: i32, %arg1: i32, %arg2: memref<1x1xi32, #tpu.memory_space<smem>>, %arg3: memref<1x2xi32, #tpu.memory_space<smem>>) -> (i32, i32) {
    %c0_i32 = arith.constant 0 : i32
    %c0_i32_0 = arith.constant 0 : i32
    return %arg0, %c0_i32 : i32, i32
  }
}

</mosaic_0001>

<bundles_post_ra>
// kernel: tpu_custom_call.1
= control target key start
LH: loop header
LB: loop body
LE: loop exit
PB: predicated region body
PF: predicated region fallthrough
CT: control target
= control target key end

     0   :  { %s889_s24 = smov [#allocation5]   ;;  %s1047_s0 = inlined_call_operand.<no memory space> [shape: s32[1,1], index: 0, kind: input, shape index: {}]   ;;  %s1048_s1 = inlined_call_operand.vmem [shape: s32[1,2], index: 1, kind: input, shape index: {}]   ;;  %s1049_s2 = inlined_call_operand.hbm [shape: bf16[128,128], index: 2, kind: input, shape index: {}]   ;;  %s1050_s3 = inlined_call_operand.vmem [shape: bf16[16,40], index: 3, kind: input, shape index: {}]   ;;  %s1051_s4 = inlined_call_operand.vmem [shape: s32[16,6], index: 4, kind: input, shape index: {}]   ;;  %s1052_s5 = inlined_call_operand.vmem [shape: bf16[40,128], index: 5, kind: input, shape index: {}]   ;;  %s1053_s6 = inlined_call_operand.hbm [shape: bf16[128,128], index: 6, kind: input, shape index: {}]   ;;  %s1054_s7 = inlined_call_operand.vmem [shape: f32[1,128], index: 7, kind: input, shape index: {}]   ;;  %s1055_s8 = inlined_call_operand.hbm [shape: bf16[128,128], index: 8, kind: input, shape index: {}]   ;;  %s1056_s9 = inlined_call_operand.vmem [shape: f32[1,128], index: 9, kind: input, shape index: {}]   ;;  %s1057_s10 = inlined_call_operand.vmem [shape: f32[1,128], index: 10, kind: input, shape index: {}]   ;;  %s1058_s11 = inlined_call_operand.vmem [shape: f32[1,128], index: 11, kind: input, shape index: {}]   ;;  %s1059_s12 = inlined_call_operand.hbm [shape: bf16[16,128], index: 12, kind: output, shape index: {}]  }
   0x1   :  { %s19_s23 = sshll.u32 %s1048_s1, 4  ;;  %s20_s23 = int_to_ptr.vmem [resolvable:$true] %s19_s23 }
   0x2   :  { %22 = dma.vmem_to_smem %s20_s23, 16, %s889_s24, [#allocation3] }
   0x3   :  { %881 = dma.done.wait [#allocation3], 16 }
   0x4   :  { %882 = vsyncadd [#allocation3], 4294967280 }
   0x5   :  { %25 = sfence }
   0x6   :  { %26 = vsyncpa [#allocation7], 0 }
   0x7   :  { %27 = vsyncpa [#allocation10], 0 }
   0x8   :  { %28 = vsyncpa [#allocation8], 0  ;;  %s59_s27 = sshll.u32 %s1053_s6, 4  ;;  %s890_s28 = smov [#allocation9]   ;;  %s60_s27 = int_to_ptr.hbm [resolvable:$true] %s59_s27 }
   0x9   :  { %s61_s29 = sshll.u32 %s890_s28, 4  ;;  %s709_s1 = sshll.u32 %s1047_s0, 6  ;;  %s62_s29 = int_to_ptr.vmem [resolvable:$true] %s61_s29 }
   0xa   :  { %s891_s14 = smov 64   ;;  %s892_s15 = smov 4  }
   0xb   :  { %67 = dma.hbm_to_vmem [thread:$0]  %s60_s27, 1024, %s62_s29, [#allocation10], %s891_s14, %s891_s14, %s892_s15  }
   0xc   :  { %s39_s18 = scalar_lea.hbm %s1049_s2, %s709_s1  ;;  %s893_s6 = smov [#allocation6]  }
   0xd   :  { %s40_s19 = sshll.u32 %s39_s18, 4  ;;  %s42_s20 = sshll.u32 %s893_s6, 4  ;;  %s41_s19 = int_to_ptr.hbm [resolvable:$true] %s40_s19  ;;  %s43_s20 = int_to_ptr.vmem [resolvable:$true] %s42_s20 }
   0xe   :  { %s809_s21 = sshra.s32 %s41_s19, 4  ;;  %s813_s24 = scalar_lea.hbm %s1049_s2, 64  ;;  %s810_s21 = int_to_ptr.hbm [resolvable:$true] %s809_s21 }
   0xf   :  { %s811_s22 = scalar_lea.hbm %s810_s21, 64  ;;  %p814_p1 = scmp.lt.s32.totalorder %s810_s21, %s1049_s2 }
  0x10   :  { %p812_p0 = scmp.ne.s32.totalorder %s810_s21, %s811_s22  ;;  %p815_p2 = scmp.lt.s32.totalorder %s813_s24, %s811_s22 }
  0x12   :  { %p816_p3 = por %p815_p2, %p814_p1 }
  0x14   :  { %p817_p4 = pnand %p816_p3, %p812_p0 }
  0x16   :  { %820 = shalt.err (!%p817_p4)
}
  0x17   :  { %48 = dma.hbm_to_vmem [thread:$0]  %s41_s19, 1024, %s43_s20, [#allocation7], %s891_s14, %s891_s14, %s892_s15  }
  0x18   :  { %s74_s29 = sshll.u32 %s1055_s8, 4  ;;  %s894_s30 = smov [#allocation11]   ;;  %s75_s29 = int_to_ptr.hbm [resolvable:$true] %s74_s29 }
  0x19   :  { %s76_s13 = sshll.u32 %s894_s30, 4  ;;  %s77_s13 = int_to_ptr.vmem [resolvable:$true] %s76_s13 }
  0x1a   :  { %82 = dma.hbm_to_vmem [thread:$0]  %s75_s29, 1024, %s77_s13, [#allocation10], %s891_s14, %s891_s14, %s892_s15  }
  0x1b   :  { %883 = dma.done.wait [#allocation7], 1024  }
  0x1c   :  { %884 = vsyncadd [#allocation7], 4294966272 }
  0x1d   :  { %885 = dma.done.wait [#allocation10], 2048  }
  0x1e   :  { %886 = vsyncadd [#allocation10], 4294965248  ;;  %s108_s2 = sld [smem:[#allocation5]]  ;;  %v895_v0 = vmov 0.0  }
  0x1f   :  { %115 = vst [vmem:[#allocation2] sm:$0xff] %v895_v0  ;;  %s597_s1 = sld [smem:[#allocation5 + $0x1]] }
  0x20   :  { %116 = vst [vmem:[#allocation2 + $0x8] sm:$0xff] %v895_v0 }
  0x25   :  { %p598_p5 = scmp.gt.s32.totalorder %s108_s2, %s597_s1 }
  0x26   :  { %s599_s17 = sshll.u32 (!%p598_p5), %s108_s2, 7 }
  0x27   :  { %121 = sbr.rel (%p598_p5) target bundleno = 335 (0x14f), region = 61 }
  0x2c   :  { %v122_v1 = vld [vmem:[%s1051_s4] sm:$0xff]  ;;  %v896_v2 = vmov 1   ;;  %v897_v3 = vmov 0   ;;  %v127_v4 = vstv %s599_s17  ;;  %v898_v6 = vmov 2   ;;  %v123_v7 = vld [vmem:[%s1051_s4 + $0x8] sm:$0xff]  ;;  %v715_v14 = vld [vmem:[#allocation6 + $0x28] sm:$0xff] }
  0x2d   :  { %757 = vset.pattern.permute.xlu1 %v896_v2  ;;  %756 = vset.pattern.permute.xlu0 %v897_v3  ;;  %v128_v5 = vsub.s32 %v122_v1, %v127_v4  ;;  %v129_v8 = vsub.s32 %v123_v7, %v127_v4  ;;  %v899_v9 = vmov 3   ;;  %v900_v10 = vmov 4   ;;  %v717_v12 = vld [vmem:[#allocation6 + $0x38] sm:$0xff]  ;;  %v716_v13 = vld [vmem:[#allocation6 + $0x30] sm:$0xff]  ;;  %v714_v15 = vld [vmem:[#allocation6 + $0x20] sm:$0xff] }
  0x2e   :  { %758 = vset.pattern.permute.xlu2 %v898_v6  ;;  %v901_v11 = vmov 5   ;;  %269 = vmatpush.bf16.msra.mxu0 %v717_v12  ;;  %v713_v16 = vld [vmem:[#allocation6 + $0x18] sm:$0xff]  ;;  %v712_v18 = vld [vmem:[#allocation6 + $0x10] sm:$0xff]  ;;  %v711_v19 = vld [vmem:[#allocation6 + $0x8] sm:$0xff]  ;;  %v124_v23 = vlaneseq }
  0x2f   :  { %141 = vperm.xlu1 %757, %v128_v5   ;;  %131 = vperm.xlu0 %756, %v128_v5   ;;  %v710_v22 = vld [vmem:[#allocation6] sm:$0xff]  ;;  %v203_v59 = vld [vmem:[#allocation2] sm:$0xff]  ;;  %v204_v62 = vld [vmem:[#allocation2 + $0x8] sm:$0xff] }
  0x30   :  { %153 = vperm.xlu2 %758, %v128_v5   ;;  %v125_v25 = vand.u32 127, %v124_v23 }
  0x32   :  { %270 = vmatpush.bf16.msra.mxu0 %v716_v13 }
  0x36   :  { %271 = vmatpush.bf16.msra.mxu0 %v715_v14 }
  0x37   :  { %144 = vperm.xlu1 %757, %v129_v8   ;;  %134 = vperm.xlu0 %756, %v129_v8  }
  0x38   :  { %156 = vperm.xlu2 %758, %v129_v8  }
  0x3a   :  { %272 = vmatpush.bf16.msra.mxu0 %v714_v15 }
  0x3e   :  { %273 = vmatpush.bf16.msra.mxu0 %v713_v16 }
  0x3f   :  { %760 = vset.pattern.permute.xlu1 %v899_v9  ;;  %759 = vset.pattern.permute.xlu0 %v899_v9 }
  0x40   :  { %168 = vperm.xlu1 %760, %v129_v8   ;;  %165 = vperm.xlu0 %759, %v128_v5  }
  0x41   :  { %761 = vset.pattern.permute.xlu2 %v900_v10 }
  0x42   :  { %177 = vperm.xlu2 %761, %v128_v5   ;;  %274 = vmatpush.bf16.msra.mxu0 %v712_v18 }
  0x46   :  { %275 = vmatpush.bf16.msra.mxu0 %v711_v19 }
  0x48   :  { %762 = vset.pattern.permute.xlu1 %v900_v10  ;;  %764 = vset.pattern.permute.xlu0 %v901_v11 }
  0x49   :  { %180 = vperm.xlu1 %762, %v129_v8   ;;  %192 = vperm.xlu0 %764, %v129_v8  }
  0x4a   :  { %763 = vset.pattern.permute.xlu2 %v901_v11  ;;  %276 = vmatpush.bf16.msra.mxu0 %v710_v22 }
  0x4b   :  { %189 = vperm.xlu2 %763, %v128_v5  }
  0x8a   :  { %v154_v17 = vpop.permute.xlu2 %153 }
  0x8b   :  { %vm158_vm2 = vcmp.eq.s32.totalorder %v154_v17, %v125_v25 }
  0x8c   :  { %v160_v32 = vsel %vm158_vm2, 1, %v897_v3 }
  0x92   :  { %v157_v24 = vpop.permute.xlu2 %156 }
  0x93   :  { %vm159_vm7 = vcmp.eq.s32.totalorder %v157_v24, %v125_v25 }
  0x94   :  { %v161_v43 = vsel %vm159_vm7, 1, %v897_v3 }
  0x9c   :  { %v178_v28 = vpop.permute.xlu2 %177 }
  0x9d   :  { %vm182_vm6 = vcmp.eq.s32.totalorder %v178_v28, %v125_v25 }
  0x9e   :  { %v184_v42 = vsel %vm182_vm6, 1, %v897_v3 }
  0xa1   :  { %v142_v20 = vpop.permute.xlu1 %141  ;;  %v132_v21 = vpop.permute.xlu0 %131 }
  0xa2   :  { %vm146_vm0 = vcmp.eq.s32.totalorder %v142_v20, %v125_v25  ;;  %vm136_vm1 = vcmp.eq.s32.totalorder %v132_v21, %v125_v25 }
  0xa3   :  { %v148_v29 = vsel %vm146_vm0, 1, %v897_v3  ;;  %v138_v30 = vsel %vm136_vm1, 1, %v897_v3 }
  0xa4   :  { %v150_v31 = vadd.s32 %v148_v29, %v138_v30 }
  0xa5   :  { %v190_v39 = vpop.permute.xlu2 %189 }
  0xa6   :  { %v162_v37 = vadd.s32 %v160_v32, %v150_v31  ;;  %vm194_vm9 = vcmp.eq.s32.totalorder %v190_v39, %v125_v25 }
  0xa7   :  { %v196_v47 = vsel %vm194_vm9, 1, %v897_v3 }
  0xa9   :  { %v145_v26 = vpop.permute.xlu1 %144  ;;  %v135_v27 = vpop.permute.xlu0 %134 }
  0xaa   :  { %vm147_vm3 = vcmp.eq.s32.totalorder %v145_v26, %v125_v25  ;;  %vm137_vm4 = vcmp.eq.s32.totalorder %v135_v27, %v125_v25 }
  0xab   :  { %v149_v35 = vsel %vm147_vm3, 1, %v897_v3  ;;  %v139_v36 = vsel %vm137_vm4, 1, %v897_v3 }
  0xac   :  { %v151_v40 = vadd.s32 %v149_v35, %v139_v36 }
  0xae   :  { %v163_v45 = vadd.s32 %v161_v43, %v151_v40 }
  0xb2   :  { %v169_v33 = vpop.permute.xlu1 %168  ;;  %v166_v34 = vpop.permute.xlu0 %165 }
  0xb3   :  { %vm170_vm5 = vcmp.eq.s32.totalorder %v166_v34, %v125_v25  ;;  %vm171_vm8 = vcmp.eq.s32.totalorder %v169_v33, %v125_v25 }
  0xb4   :  { %v172_v38 = vsel %vm170_vm5, 1, %v897_v3  ;;  %v173_v44 = vsel %vm171_vm8, 1, %v897_v3 }
  0xb5   :  { %v174_v41 = vadd.s32 %v172_v38, %v162_v37  ;;  %v175_v50 = vadd.s32 %v173_v44, %v163_v45 }
  0xb7   :  { %v186_v46 = vadd.s32 %v184_v42, %v174_v41 }
  0xb9   :  { %v198_v53 = vadd.s32 %v196_v47, %v186_v46 }
  0xbb   :  { %v181_v48 = vpop.permute.xlu1 %180  ;;  %v193_v49 = vpop.permute.xlu0 %192  ;;  %v200_v56 = vcvt.s32.f32 %v198_v53 }
  0xbc   :  { %vm183_vm10 = vcmp.eq.s32.totalorder %v181_v48, %v125_v25  ;;  %vm195_vm11 = vcmp.eq.s32.totalorder %v193_v49, %v125_v25 }
  0xbd   :  { %v185_v51 = vsel %vm183_vm10, 1, %v897_v3  ;;  %v197_v52 = vsel %vm195_vm11, 1, %v897_v3 }
  0xbe   :  { %v187_v54 = vadd.s32 %v185_v51, %v175_v50 }
  0xc0   :  { %v199_v55 = vadd.s32 %v197_v52, %v187_v54 }
  0xc2   :  { %v201_v57 = vcvt.s32.f32 %v199_v55 }
  0xc4   :  { %v202_v58 = vpack.c.bf16 %v201_v57, %v200_v56 }
  0xc6   :  { %277 = vmatmul.bf16.vlgmr.msra.gmra.mxu0 %v202_v58 }
 0x143   :  { %v278_v60 = vpop.f32.mrf.mxu0 }
 0x144   :  { %v283_v61 = vadd.f32 %v278_v60, %v203_v59 }
 0x146   :  { %285 = vst [vmem:[#allocation2] sm:$0xff] %v283_v61 }
 0x14b   :  { %v280_v63 = vpop.f32.mrf.mxu0 }
 0x14c   :  { %v284_v0 = vadd.f32 %v280_v63, %v204_v62 }
 0x14e   :  { %286 = vst [vmem:[#allocation2 + $0x8] sm:$0xff] %v284_v0 }
 0x14f PF:  { %v728_v1 = vld [vmem:[#allocation9 + $0x38] sm:$0xff]  ;;  %v298_v2 = vld [vmem:[%s1052_s5 + $0x10] sm:$0xf]  ;;  %v727_v3 = vld [vmem:[#allocation9 + $0x30] sm:$0xff]  ;;  %vm402_vm12 = vcmask 1043456   ;;  %vm398_vm13 = vcmask 326656  }
 0x150   :  { %364 = vmatpush.bf16.msra.mxu0 %v728_v1  ;;  %v392_v4 = vunpack.c.l.b16 %v298_v2  ;;  %v736_v6 = vld [vmem:[#allocation11 + $0x38] sm:$0xff]  ;;  %v726_v7 = vld [vmem:[#allocation9 + $0x28] sm:$0xff]  ;;  %v735_v9 = vld [vmem:[#allocation11 + $0x30] sm:$0xff]  ;;  %s902_s29 = smov [#allocation12]   ;;  %s579_s1 = sshll.u32 %s1059_s12, 4  ;;  %s580_s1 = int_to_ptr.hbm [resolvable:$true] %s579_s1 }
 0x151   :  { %497 = vmatpush.bf16.msra.mxu2 %v736_v6  ;;  %v720_v10 = vld [vmem:[%s1052_s5 + $0x8] sm:$0xff]  ;;  %v725_v11 = vld [vmem:[#allocation9 + $0x20] sm:$0xff]  ;;  %v719_v12 = vld [vmem:[%s1052_s5] sm:$0xff]  ;;  %s577_s30 = sshll.u32 %s902_s29, 4  ;;  %s578_s30 = int_to_ptr.vmem [resolvable:$true] %s577_s30 }
 0x152   :  { %v395_v5 = vpack.c.b16 %v392_v4, %v392_v4  ;;  %v724_v13 = vld [vmem:[#allocation9 + $0x18] sm:$0xff]  ;;  %v718_v14 = vld [vmem:[%s1050_s3] sm:$0xff]  ;;  %v722_v16 = vld [vmem:[#allocation9 + $0x8] sm:$0xff] }
 0x153   :  { %v723_v15 = vld [vmem:[#allocation9 + $0x10] sm:$0xff]  ;;  %v721_v17 = vld [vmem:[#allocation9] sm:$0xff]  ;;  %v734_v21 = vld [vmem:[#allocation11 + $0x28] sm:$0xff] }
 0x154   :  { %365 = vmatpush.bf16.msra.mxu0 %v727_v3  ;;  %v404_v8 = vsel %vm402_vm12, %v395_v5, 0  ;;  %v290_v18 = vld [vmem:[#allocation2] sm:$0xff]  ;;  %v733_v22 = vld [vmem:[#allocation11 + $0x20] sm:$0xff]  ;;  %v732_v23 = vld [vmem:[#allocation11 + $0x18] sm:$0xff] }
 0x155   :  { %411 = vmatpush.bf16.msra.mxu1 %v404_v8  ;;  %498 = vmatpush.bf16.msra.mxu2 %v735_v9  ;;  %v291_v19 = vld [vmem:[#allocation2 + $0x8] sm:$0xff]  ;;  %v731_v24 = vld [vmem:[#allocation11 + $0x10] sm:$0xff]  ;;  %v730_v25 = vld [vmem:[#allocation11 + $0x8] sm:$0xff] }
 0x156   :  { %v299_v20 = vpack.c.bf16 %v291_v19, %v290_v18  ;;  %v729_v26 = vld [vmem:[#allocation11] sm:$0xff]  ;;  %v765_v30 = vld [vmem:[%s1054_s7] ss:$0 sm:$0xff] }
 0x157   :  { %v766_v39 = vld [vmem:[%s1056_s9] ss:$0 sm:$0xff] }
 0x158   :  { %366 = vmatpush.bf16.msra.mxu0 %v726_v7  ;;  %v768_v18 = vld [vmem:[%s1058_s11] ss:$0 sm:$0xff] }
 0x159   :  { %412 = vmatpush.bf16.msra.mxu1 %v720_v10  ;;  %499 = vmatpush.bf16.msra.mxu2 %v734_v21 }
 0x15c   :  { %367 = vmatpush.bf16.msra.mxu0 %v725_v11 }
 0x15d   :  { %413 = vmatpush.bf16.msra.mxu1 %v719_v12  ;;  %500 = vmatpush.bf16.msra.mxu2 %v733_v22  ;;  %v767_v12 = vld [vmem:[%s1057_s10] ss:$0 sm:$0xff] }
 0x160   :  { %368 = vmatpush.bf16.msra.mxu0 %v724_v13  ;;  %676 = vmatmul.msk.bf16.vlgmr.msra.gmra.mxu1 %vm398_vm13, %v718_v14 }
 0x161   :  { %501 = vmatpush.bf16.msra.mxu2 %v732_v23 }
 0x164   :  { %369 = vmatpush.bf16.msra.mxu0 %v723_v15 }
 0x165   :  { %502 = vmatpush.bf16.msra.mxu2 %v731_v24 }
 0x168   :  { %370 = vmatpush.bf16.msra.mxu0 %v722_v16 }
 0x169   :  { %503 = vmatpush.bf16.msra.mxu2 %v730_v25 }
 0x16c   :  { %371 = vmatpush.bf16.msra.mxu0 %v721_v17 }
 0x16d   :  { %504 = vmatpush.bf16.msra.mxu2 %v729_v26 }
 0x16f   :  { %372 = vmatmul.bf16.vlgmr.msra.gmra.mxu0 %v299_v20 }
 0x1dd   :  { %v415_v27 = vpop.f32.mrf.mxu1 }
 0x1e5   :  { %v417_v31 = vpop.f32.mrf.mxu1 }
 0x1ec   :  { %v373_v28 = vpop.f32.mrf.mxu0 }
 0x1ed   :  { %v416_v29 = vadd.f32 %v415_v27, %v373_v28 }
 0x1ef   :  { %v424_v33 = vadd.f32 %v765_v30, %v416_v29 }
 0x1f1   :  { %v426_v36 = vmax.f32 %v424_v33, 0.0 }
 0x1f4   :  { %v375_v32 = vpop.f32.mrf.mxu0 }
 0x1f5   :  { %v418_v34 = vadd.f32 %v417_v31, %v375_v32 }
 0x1f7   :  { %v425_v35 = vadd.f32 %v765_v30, %v418_v34 }
 0x1f9   :  { %v427_v37 = vmax.f32 %v425_v35, 0.0 }
 0x1fb   :  { %v428_v38 = vpack.c.bf16 %v427_v37, %v426_v36 }
 0x1fd   :  { %505 = vmatmul.bf16.vlgmr.msra.gmra.mxu2 %v428_v38 }
 0x280   :  { %v506_v40 = vpop.f32.mrf.mxu2 }
 0x281   :  { %v507_v41 = vadd.f32 %v766_v39, %v506_v40 }
 0x283   :  { %511 = vadd.xlane.f32.xlu0 %v507_v41  ;;  %v517_v42 = vmul.f32 %v507_v41, %v507_v41 }
 0x285   :  { %519 = vadd.xlane.f32.xlu1 %v517_v42 }
 0x288   :  { %v508_v43 = vpop.f32.mrf.mxu2 }
 0x289   :  { %v509_v44 = vadd.f32 %v766_v39, %v508_v43 }
 0x28b   :  { %513 = vadd.xlane.f32.xlu0 %v509_v44  ;;  %v518_v45 = vmul.f32 %v509_v44, %v509_v44 }
 0x28d   :  { %521 = vadd.xlane.f32.xlu1 %v518_v45 }
 0x2f6   :  { %v512_v46 = vpop.xlane.xlu0 %511 }
 0x2f7   :  { %v515_v47 = vmul.f32 0.03125, %v512_v46 }
 0x2f8   :  { %v520_v48 = vpop.xlane.xlu1 %519 }
 0x2f9   :  { %v525_v49 = vmul.f32 %v515_v47, %v515_v47  ;;  %v523_v50 = vmul.f32 0.03125, %v520_v48  ;;  %v531_v9 = vsub.f32 %v507_v41, %v515_v47 }
 0x2fb   :  { %v527_v51 = vsub.f32 %v523_v50, %v525_v49 }
 0x2fd   :  { %v529_v52 = vmax.f32 %v527_v51, 0.0 }
 0x2fe   :  { %v514_v53 = vpop.xlane.xlu0 %513 }
 0x2ff   :  { %v533_v54 = vadd.f32 1e-05, %v529_v52  ;;  %v516_v55 = vmul.f32 0.03125, %v514_v53 }
 0x300   :  { %v522_v56 = vpop.xlane.xlu1 %521 }
 0x301   :  { %769 = vrsqrt.f32 %v533_v54  ;;  %v526_v57 = vmul.f32 %v516_v55, %v516_v55  ;;  %v524_v58 = vmul.f32 0.03125, %v522_v56  ;;  %vm541_vm15 = vweird.f32 %v533_v54 }
 0x302   :  { %v532_v14 = vsub.f32 %v509_v44, %v516_v55 }
 0x303   :  { %v528_v59 = vsub.f32 %v524_v58, %v526_v57 }
 0x305   :  { %v530_v60 = vmax.f32 %v528_v59, 0.0 }
 0x307   :  { %v770_v61 = vpop.eup %769  ;;  %v534_v63 = vadd.f32 1e-05, %v530_v60 }
 0x308   :  { %v536_v62 = vmul.f32 %v770_v61, %v533_v54  ;;  %vm542_vm14 = vweird.f32 %v770_v61 }
 0x309   :  { %771 = vrsqrt.f32 %v534_v63  ;;  %vm543_vm0 = vmor %vm541_vm15, %vm542_vm14  ;;  %vm551_vm2 = vweird.f32 %v534_v63 }
 0x30a   :  { %v537_v0 = vmul.f32 %v770_v61, %v536_v62 }
 0x30c   :  { %v538_v1 = vmul.f32 0.5, %v537_v0 }
 0x30e   :  { %v539_v2 = vsub.f32 1.5, %v538_v1 }
 0x30f   :  { %v772_v3 = vpop.eup %771 }
 0x310   :  { %v540_v4 = vmul.f32 %v770_v61, %v539_v2  ;;  %v546_v5 = vmul.f32 %v772_v3, %v534_v63  ;;  %vm552_vm1 = vweird.f32 %v772_v3 }
 0x311   :  { %vm553_vm3 = vmor %vm551_vm2, %vm552_vm1 }
 0x312   :  { %v547_v6 = vmul.f32 %v772_v3, %v546_v5  ;;  %v544_v8 = vsel %vm543_vm0, %v770_v61, %v540_v4 }
 0x313   :  { %v555_v11 = vmul.f32 %v544_v8, %v531_v9 }
 0x314   :  { %v548_v7 = vmul.f32 0.5, %v547_v6 }
 0x315   :  { %v561_v17 = vmul.f32 %v767_v12, %v555_v11 }
 0x316   :  { %v549_v10 = vsub.f32 1.5, %v548_v7 }
 0x317   :  { %v567_v20 = vadd.f32 %v768_v18, %v561_v17 }
 0x318   :  { %v550_v13 = vmul.f32 %v772_v3, %v549_v10 }
 0x31a   :  { %v554_v15 = vsel %vm553_vm3, %v772_v3, %v550_v13 }
 0x31b   :  { %v556_v16 = vmul.f32 %v554_v15, %v532_v14 }
 0x31d   :  { %v562_v19 = vmul.f32 %v767_v12, %v556_v16 }
 0x31f   :  { %v568_v21 = vadd.f32 %v768_v18, %v562_v19 }
 0x321   :  { %v740_v22 = vpack.c.bf16 %v568_v21, %v567_v20 }
 0x323   :  { %741 = vst [vmem:[#allocation12] sm:$0xff] %v740_v22  }
 0x324   :  { %585 = dma.vmem_to_hbm [thread:$0]  %s578_s30, 128, %s580_s1, [#allocation8], %s891_s14, %s891_s14, %s892_s15  }
 0x325   :  { %887 = dma.done.wait [#allocation8], 128  }
 0x326   :  { %888 = vsyncadd [#allocation8], 4294967168 }
 0x327   :  { %590 = vsyncpa [#allocation7], 1 }
 0x328   :  { %591 = vsyncpa [#allocation10], 1 }
 0x329   :  { %592 = vsyncpa [#allocation8], 1 }

</bundles_post_ra>
